<compile_context>
chip_gen: v7x
topology: tpu7x:2x2x1
jax: 0.10.0
libtpu: 0.0.40
codegen_flags: <defaults>
</compile_context>

<pallas_src>
import functools

import jax
import jax.numpy as jnp
from jax import lax
from jax.experimental import pallas as pl
from jax.experimental.pallas import tpu as pltpu


def conv_layer_kernel(x_ref, rhs_ref, p_ref, o_ref, *, Wo, Cout,
                      instance_norm, relu, eps):
    """One image per grid step.

    x_ref:   (1, Ho, K*Wp*Cin)   folded LHS (kh tap + h-stride folded in) [bf16]
    rhs_ref: (K*Wp*Cin, Wo*Cout) banded weights (kw & w-stride folded in) [bf16]
    p_ref:   (8, Wo*Cout)        f32 params; rows: bias, gamma, beta, prelu_a, pad
    o_ref:   (1, Ho, Wo*Cout)    lane-dense output slab
    """
    x = x_ref[0]                                         # (Ho, K*Wp*Cin)

    # Single deep-contraction MXU matmul, bf16 operands, f32 accumulation.
    acc = jnp.dot(x, rhs_ref[...], preferred_element_type=jnp.float32)

    if instance_norm:
        # Conv bias cancels exactly under per-channel mean subtraction: skipped.
        ho = acc.shape[0]
        lout = Wo * Cout
        inv_n = 1.0 / float(ho * Wo)

        def lane_allreduce(v):
            # Sum over the Wo same-channel lanes (lane = w*Cout + c) with a
            # log2(Wo)-step roll tree (XLU); result is already broadcast across
            # each channel's lanes.  Requires Wo to be a power of two.
            shift = Cout
            while shift < lout:
                v = v + pltpu.roll(v, shift, axis=1)
                shift *= 2
            return v

        mean = lane_allreduce(jnp.sum(acc, axis=0, keepdims=True)) * inv_n
        centered = acc - mean                            # centered variance: no
        var = lane_allreduce(                            # E[x^2]-mean^2 cancellation
            jnp.sum(centered * centered, axis=0, keepdims=True)) * inv_n
        scale = p_ref[1:2, :] * lax.rsqrt(var + eps)     # gamma / std
        acc = centered * scale + p_ref[2:3, :]           # + beta
    else:
        acc = acc + p_ref[0:1, :]                        # conv bias

    if relu:
        a = p_ref[3:4, :]                                # PReLU slope, lane-tiled
        acc = jnp.where(acc >= 0.0, acc, a * acc)

    o_ref[0] = acc.astype(o_ref.dtype)                   # unmasked full-lane stores


def _banded_rhs(w_hwio, Wp, Wo, stride):
    """rhs[kh*Wp*Cin + w'*Cin + cin, w*Cout + c] = W[kh, w'-w*stride, cin, c]
    (zero outside the band).  Folds kw and the w-stride into the contraction."""
    K, _, Cin, Cout = w_hwio.shape
    kw_idx = jnp.arange(Wp)[:, None] - jnp.arange(Wo)[None, :] * stride  # (Wp, Wo)
    valid = (kw_idx >= 0) & (kw_idx < K)
    kw_safe = jnp.clip(kw_idx, 0, K - 1)
    b = w_hwio[:, kw_safe, :, :]                          # (K, Wp, Wo, Cin, Cout)
    b = jnp.where(valid[None, :, :, None, None], b, 0.0)
    b = jnp.transpose(b, (0, 1, 3, 2, 4))                 # (K, Wp, Cin, Wo, Cout)
    return b.reshape(K * Wp * Cin, Wo * Cout)


def conv_layer(x_nchw, weight_oihw, bias, gamma, beta, prelu_a, *,
               stride=1, relu=True, instance_norm=True, padding=True,
               eps=1e-5, compute_dtype=jnp.bfloat16):
    """Forward pass equivalent to PyNETv2 ConvLayer.  Input/output are NCHW."""
    N, Cin, H, W = x_nchw.shape
    Cout, _, K, _ = weight_oihw.shape

    # Wrapper glue: NCHW -> NHWC, reflection pad.
    x = jnp.transpose(x_nchw, (0, 2, 3, 1))
    if padding:
        p = K // 2
        x = jnp.pad(x, ((0, 0), (p, p), (p, p), (0, 0)), mode="reflect")
    Hp, Wp = x.shape[1], x.shape[2]
    Ho = (Hp - K) // stride + 1
    Wo = (Wp - K) // stride + 1
    Lout = Wo * Cout

    if instance_norm:
        assert Wo & (Wo - 1) == 0, (
            f"roll-based per-channel reduction needs power-of-two Wo, got {Wo}")
    # Note: stores are only fully lane-dense (unmasked vst) when Lout % 128 == 0
    # (holds for the test shape); other widths still run correctly.

    # Fold kh taps (and the h-stride row decimation) into the lane axis on the
    # wrapper side: x_fold[b, ho, kh*Wp*Cin + w'*Cin + cin]
    #             = x_padded[b, ho*stride + kh, w', cin].
    x_flat = x.reshape(N, Hp, Wp * Cin)
    rows = [x_flat[:, kh:kh + (Ho - 1) * stride + 1:stride, :] for kh in range(K)]
    x_fold = jnp.concatenate(rows, axis=-1).astype(compute_dtype)  # (N,Ho,K*Wp*Cin)

    w_hwio = jnp.transpose(weight_oihw, (2, 3, 1, 0)).astype(jnp.float32)
    rhs = _banded_rhs(w_hwio, Wp, Wo, stride).astype(compute_dtype)

    # Pack all per-channel params into one (8, Lout) f32 slab (single DMA/tile).
    def tile_c(v, fill):
        if v is None:
            v = jnp.full((Cout,), fill, jnp.float32)
        v = jnp.broadcast_to(jnp.asarray(v, jnp.float32).reshape(-1), (Cout,))
        return jnp.tile(v, Wo)

    zero_row = jnp.zeros((Lout,), jnp.float32)
    params = jnp.stack([
        tile_c(bias, 0.0),        # row 0: conv bias   (used only w/o IN)
        tile_c(gamma, 1.0),       # row 1: IN gamma
        tile_c(beta, 0.0),        # row 2: IN beta
        tile_c(prelu_a, 0.0),     # row 3: PReLU slope
        zero_row, zero_row, zero_row, zero_row,
    ])

    kernel = functools.partial(conv_layer_kernel, Wo=Wo, Cout=Cout,
                               instance_norm=instance_norm, relu=relu, eps=eps)

    out = pl.pallas_call(
        kernel,
        out_shape=jax.ShapeDtypeStruct((N, Ho, Lout), x_nchw.dtype),
        grid=(N,),
        in_specs=[
            pl.BlockSpec((1, Ho, K * Wp * Cin), lambda b: (b, 0, 0)),
            pl.BlockSpec((K * Wp * Cin, Lout), lambda b: (0, 0)),
            pl.BlockSpec((8, Lout), lambda b: (0, 0)),
        ],
        out_specs=pl.BlockSpec((1, Ho, Lout), lambda b: (b, 0, 0)),
        compiler_params=pltpu.CompilerParams(
            dimension_semantics=("parallel",)),
    )(x_fold, rhs, params)

    # Lane-dense (N, Ho, Wo*Cout) -> (N, Cout, Ho, Wo); reshape is wrapper-side.
    out = out.reshape(N, Ho, Wo, Cout)
    return jnp.transpose(out, (0, 3, 1, 2))


def reference(x, weight, bias, gamma, beta, a, *, stride, eps):
    """Plain-JAX f32 reference of the same forward pass (NCHW)."""
    K = weight.shape[-1]
    pad = K // 2
    xp = jnp.pad(x, ((0, 0), (0, 0), (pad, pad), (pad, pad)), mode="reflect")
    out = lax.conv_general_dilated(
        xp, weight, (stride, stride), "VALID",
        dimension_numbers=("NCHW", "OIHW", "NCHW"))
    out = out + bias[None, :, None, None]
    mean = jnp.mean(out, axis=(2, 3), keepdims=True)
    var = jnp.mean((out - mean) ** 2, axis=(2, 3), keepdims=True)
    out = (out - mean) / jnp.sqrt(var + eps)
    out = out * gamma[None, :, None, None] + beta[None, :, None, None]
    out = jnp.where(out >= 0, out, a * out)
    return out


if __name__ == "__main__":
    # ConvLayer(in_channels=4, out_channels=8, kernel_size=3, stride=1,
    #           relu=True, instance_norm=True, padding=True)
    N, Cin, H, W = 2, 4, 16, 16
    Cout, K, stride = 8, 3, 1
    eps = 1e-5

    key = jax.random.PRNGKey(0)
    kx, kw, kb, kg, kbe = jax.random.split(key, 5)
    x = jax.random.normal(kx, (N, Cin, H, W), jnp.float32)
    weight = 0.1 * jax.random.normal(kw, (Cout, Cin, K, K), jnp.float32)
    bias = 0.1 * jax.random.normal(kb, (Cout,), jnp.float32)
    gamma = 1.0 + 0.1 * jax.random.normal(kg, (Cout,), jnp.float32)
    beta = 0.05 * jax.random.normal(kbe, (Cout,), jnp.float32)
    prelu_a = jnp.array(0.25, jnp.float32)      # nn.PReLU() default init

    out = conv_layer(x, weight, bias, gamma, beta, prelu_a,
                     stride=stride, relu=True, instance_norm=True,
                     padding=True, eps=eps)
    out = jax.block_until_ready(out)

    ref = reference(x, weight, bias, gamma, beta, prelu_a, stride=stride, eps=eps)
    assert out.shape == (N, Cout, H, W), out.shape
    # bf16 matmul operands (f32 accumulation / f32 centered stats): tolerance
    # reflects bf16 operand rounding amplified by the instance-norm 1/std scale.
    max_err = float(jnp.max(jnp.abs(out - ref)))
    assert jnp.allclose(out, ref, atol=3e-2, rtol=3e-2), max_err
    print("KERNEL_OK")
</pallas_src>

<mosaic_0001>
module attributes {stable_mosaic.version = 11 : i64} {
  func.func @conv_layer_kernel(%arg0: i32, %arg1: memref<1x16x216xbf16, #tpu.memory_space<vmem>>, %arg2: memref<216x128xbf16, #tpu.memory_space<vmem>>, %arg3: memref<8x128xf32, #tpu.memory_space<vmem>>, %arg4: memref<1x16x128xf32, #tpu.memory_space<vmem>>) attributes {dimension_semantics = [#tpu.dimension_semantics<parallel>], iteration_bounds = array<i64: 2>, scalar_prefetch = 0 : i64, scratch_operands = 0 : i64, tpu.core_type = #tpu.core_type<tc>, window_params = [{transform_indices = @transform_0, window_bounds = array<i64: 1, 16, 216>}, {pipeline_mode = #tpu.pipeline_mode<synchronous>, transform_indices = @transform_1, window_bounds = array<i64: 216, 128>}, {pipeline_mode = #tpu.pipeline_mode<synchronous>, transform_indices = @transform_2, window_bounds = array<i64: 8, 128>}, {transform_indices = @transform_3, window_bounds = array<i64: 1, 16, 128>}]} {
    %c0 = arith.constant 0 : index
    %c0_0 = arith.constant 0 : index
    %c0_1 = arith.constant 0 : index
    %0 = vector.load %arg1[%c0, %c0_0, %c0_1] : memref<1x16x216xbf16, #tpu.memory_space<vmem>>, vector<1x16x216xbf16>
    %1 = vector.shape_cast %0 : vector<1x16x216xbf16> to vector<16x216xbf16>
    %c0_2 = arith.constant 0 : index
    %c0_3 = arith.constant 0 : index
    %2 = vector.load %arg2[%c0_2, %c0_3] : memref<216x128xbf16, #tpu.memory_space<vmem>>, vector<216x128xbf16>
    %cst = arith.constant dense<0.000000e+00> : vector<16x128xf32>
    %3 = tpu.matmul %1, %2, %cst {dimension_numbers = #tpu.dot_dimension_numbers<[1], [0], [0], [1], [0, 0, 1, 1], [], []>} : vector<16x216xbf16>, vector<216x128xbf16>, vector<16x128xf32> -> vector<16x128xf32>
    %cst_4 = arith.constant dense<0.000000e+00> : vector<128xf32>
    %4 = vector.multi_reduction <add>, %3, %cst_4 [0] : vector<16x128xf32> to vector<128xf32>
    %5 = vector.shape_cast %4 : vector<128xf32> to vector<1x128xf32>
    %c8_i32 = arith.constant 8 : i32
    %6 = tpu.dynamic_rotate %5 by %c8_i32 dim 1 : vector<1x128xf32>, i32 -> vector<1x128xf32>
    %7 = arith.addf %5, %6 : vector<1x128xf32>
    %c16_i32 = arith.constant 16 : i32
    %8 = tpu.dynamic_rotate %7 by %c16_i32 dim 1 : vector<1x128xf32>, i32 -> vector<1x128xf32>
    %9 = arith.addf %7, %8 : vector<1x128xf32>
    %c32_i32 = arith.constant 32 : i32
    %10 = tpu.dynamic_rotate %9 by %c32_i32 dim 1 : vector<1x128xf32>, i32 -> vector<1x128xf32>
    %11 = arith.addf %9, %10 : vector<1x128xf32>
    %c64_i32 = arith.constant 64 : i32
    %12 = tpu.dynamic_rotate %11 by %c64_i32 dim 1 : vector<1x128xf32>, i32 -> vector<1x128xf32>
    %13 = arith.addf %11, %12 : vector<1x128xf32>
    %cst_5 = arith.constant 3.906250e-03 : f32
    %14 = vector.broadcast %cst_5 : f32 to vector<1x128xf32>
    %15 = arith.mulf %13, %14 : vector<1x128xf32>
    %16 = vector.broadcast %15 : vector<1x128xf32> to vector<16x128xf32>
    %17 = arith.subf %3, %16 : vector<16x128xf32>
    %18 = arith.mulf %17, %17 : vector<16x128xf32>
    %cst_6 = arith.constant dense<0.000000e+00> : vector<128xf32>
    %19 = vector.multi_reduction <add>, %18, %cst_6 [0] : vector<16x128xf32> to vector<128xf32>
    %20 = vector.shape_cast %19 : vector<128xf32> to vector<1x128xf32>
    %c8_i32_7 = arith.constant 8 : i32
    %21 = tpu.dynamic_rotate %20 by %c8_i32_7 dim 1 : vector<1x128xf32>, i32 -> vector<1x128xf32>
    %22 = arith.addf %20, %21 : vector<1x128xf32>
    %c16_i32_8 = arith.constant 16 : i32
    %23 = tpu.dynamic_rotate %22 by %c16_i32_8 dim 1 : vector<1x128xf32>, i32 -> vector<1x128xf32>
    %24 = arith.addf %22, %23 : vector<1x128xf32>
    %c32_i32_9 = arith.constant 32 : i32
    %25 = tpu.dynamic_rotate %24 by %c32_i32_9 dim 1 : vector<1x128xf32>, i32 -> vector<1x128xf32>
    %26 = arith.addf %24, %25 : vector<1x128xf32>
    %c64_i32_10 = arith.constant 64 : i32
    %27 = tpu.dynamic_rotate %26 by %c64_i32_10 dim 1 : vector<1x128xf32>, i32 -> vector<1x128xf32>
    %28 = arith.addf %26, %27 : vector<1x128xf32>
    %cst_11 = arith.constant 3.906250e-03 : f32
    %29 = vector.broadcast %cst_11 : f32 to vector<1x128xf32>
    %30 = arith.mulf %28, %29 : vector<1x128xf32>
    %c1 = arith.constant 1 : index
    %c0_12 = arith.constant 0 : index
    %31 = vector.load %arg3[%c1, %c0_12] : memref<8x128xf32, #tpu.memory_space<vmem>>, vector<1x128xf32>
    %cst_13 = arith.constant 9.99999974E-6 : f32
    %32 = vector.broadcast %cst_13 : f32 to vector<1x128xf32>
    %33 = arith.addf %30, %32 : vector<1x128xf32>
    %34 = math.rsqrt %33 : vector<1x128xf32>
    %35 = arith.mulf %31, %34 : vector<1x128xf32>
    %36 = vector.broadcast %35 : vector<1x128xf32> to vector<16x128xf32>
    %37 = arith.mulf %17, %36 : vector<16x128xf32>
    %c2 = arith.constant 2 : index
    %c0_14 = arith.constant 0 : index
    %38 = vector.load %arg3[%c2, %c0_14] : memref<8x128xf32, #tpu.memory_space<vmem>>, vector<1x128xf32>
    %39 = vector.broadcast %38 : vector<1x128xf32> to vector<16x128xf32>
    %40 = arith.addf %37, %39 : vector<16x128xf32>
    %c3 = arith.constant 3 : index
    %c0_15 = arith.constant 0 : index
    %41 = vector.load %arg3[%c3, %c0_15] : memref<8x128xf32, #tpu.memory_space<vmem>>, vector<1x128xf32>
    %cst_16 = arith.constant 0.000000e+00 : f32
    %42 = vector.broadcast %cst_16 : f32 to vector<16x128xf32>
    %43 = arith.cmpf oge, %40, %42 : vector<16x128xf32>
    %44 = vector.broadcast %41 : vector<1x128xf32> to vector<16x128xf32>
    %45 = arith.mulf %44, %40 : vector<16x128xf32>
    %46 = arith.select %43, %40, %45 : vector<16x128xi1>, vector<16x128xf32>
    %c0_17 = arith.constant 0 : index
    %c0_18 = arith.constant 0 : index
    %c0_19 = arith.constant 0 : index
    %47 = vector.load %arg4[%c0_17, %c0_18, %c0_19] : memref<1x16x128xf32, #tpu.memory_space<vmem>>, vector<1x16x128xf32>
    %48 = vector.shape_cast %47 : vector<1x16x128xf32> to vector<16x128xf32>
    %49 = vector.shape_cast %46 : vector<16x128xf32> to vector<1x16x128xf32>
    tpu.vector_store %arg4[%c0_17, %c0_18, %c0_19], %49 {strides = array<i32>} : memref<1x16x128xf32, #tpu.memory_space<vmem>>, vector<1x16x128xf32>,
    return
  }
  func.func @transform_0(%arg0: i32) -> (i32, i32, i32) {
    %c0_i32 = arith.constant 0 : i32
    %c0_i32_0 = arith.constant 0 : i32
    %c0_i32_1 = arith.constant 0 : i32
    return %arg0, %c0_i32, %c0_i32_0 : i32, i32, i32
  }
  func.func @transform_1(%arg0: i32) -> (i32, i32) {
    %c0_i32 = arith.constant 0 : i32
    %c0_i32_0 = arith.constant 0 : i32
    %c0_i32_1 = arith.constant 0 : i32
    return %c0_i32, %c0_i32_0 : i32, i32
  }
  func.func @transform_2(%arg0: i32) -> (i32, i32) {
    %c0_i32 = arith.constant 0 : i32
    %c0_i32_0 = arith.constant 0 : i32
    %c0_i32_1 = arith.constant 0 : i32
    return %c0_i32, %c0_i32_0 : i32, i32
  }
  func.func @transform_3(%arg0: i32) -> (i32, i32, i32) {
    %c0_i32 = arith.constant 0 : i32
    %c0_i32_0 = arith.constant 0 : i32
    %c0_i32_1 = arith.constant 0 : i32
    return %arg0, %c0_i32, %c0_i32_0 : i32, i32, i32
  }
}

</mosaic_0001>

<bundles_post_ra>
// kernel: tpu_custom_call.1
= control target key start
LH: loop header
LB: loop body
LE: loop exit
PB: predicated region body
PF: predicated region fallthrough
CT: control target
= control target key end

     0   :  { %8 = vsyncpa [#allocation3], 0  ;;  %s1143_s0 = inlined_call_operand.hbm [shape: bf16[2,16,216], index: 0, kind: input, shape index: {}]   ;;  %s1144_s1 = inlined_call_operand.hbm [shape: bf16[216,128], index: 1, kind: input, shape index: {}]   ;;  %s1145_s2 = inlined_call_operand.hbm [shape: f32[8,128], index: 2, kind: input, shape index: {}]   ;;  %s1146_s3 = inlined_call_operand.hbm [shape: f32[2,16,128], index: 3, kind: output, shape index: {}]  }
   0x1   :  { %10 = vsyncpa [#allocation3 + $0x1], 0 }
   0x2   :  { %11 = vsyncpa [#allocation6], 0 }
   0x3   :  { %12 = vsyncpa [#allocation4], 0 }
   0x4   :  { %14 = vsyncpa [#allocation4 + $0x1], 0  ;;  %s896_s12 = smov 0   ;;  %s898_s13 = smov 0  }
   0x5   :  { %s900_s14 = smov 0   ;;  %s902_s15 = smov 0  }
   0x6 LB: > { %s917_s16 = sadd.s32 4294967295, %s860_s15   ;;  %s569_s17 = sadd.s32 4294967294, %s860_s15   ;;  %s860_s15 = sphi %s902_s15, %s1166_s15   ;;  %s856_s14 = sphi %s900_s14, %s1165_s14   ;;  %s852_s13 = sphi %s898_s13, %s1164_s13   ;;  %s848_s12 = sphi %s896_s12, %s1163_s12  }
   0x7   : > { %p40_p0 = scmp.ne.s32.totalorder %s852_s13, %s848_s12  ;;  %p1147_p1 = scmp.eq.s32.totalorder %s917_s16, 0 }
   0x8   : > { %p112_p3 = scmp.eq.s32.totalorder %s569_s17, 1  ;;  %p570_p5 = scmp.ge.s32.totalorder %s860_s15, 1 }
   0x9   : > { %p926_p4 = por %p1147_p1, %p40_p0  ;;  %p119_p7 = scmp.lt.s32.totalorder %s860_s15, 3 }
   0xa   : > { %p931_p6 = por %p112_p3, %p40_p0  ;;  %s862_s21 = smov [#allocation5]  }
   0xb   : > { %s1150_s18 = scalar_select %p926_p4, 1, 0 }
   0xc   : > { %s1151_s19 = scalar_select %p931_p6, 1, 0 }
   0xd   : > { %p936_p8 = pnand %p570_p5, %p119_p7  ;;  %s131_s22 = sshll.u32 %s862_s21, 4  ;;  %s940_s22 = int_to_ptr.vmem [resolvable:$true] %s131_s22 }
   0xe   : > { %s863_s24 = smov [#allocation7]   ;;  %s704_s28 = scalar_lea.hbm %s1144_s1, 1728 }
   0xf   : > { %p620_p9 = pneg %p936_p8  ;;  %s145_s25 = sshll.u32 %s863_s24, 4  ;;  %s951_s25 = int_to_ptr.vmem [resolvable:$true] %s145_s25 }
  0x10   : > { %p705_p12 = scmp.ne.s32.totalorder %s1144_s1, %s704_s28  ;;  %p711_p5 = scmp.lt.u32.totalorder %s704_s28, %s1144_s1 }
  0x11   : > { %p947_p11 = pnand %p620_p9, %p1147_p1 }
  0x13   : > { %p706_p13 = pneg %p947_p11 }
  0x15   : > { %p707_p0 = pnand %p706_p13, %p705_p12 }
  0x17   : > { %p708_p3 = pneg %p707_p0 }
  0x19   : > { %p713_p7 = pnand %p711_p5, %p708_p3 }
  0x1b   : > { %716 = shalt.err (!%p713_p7)
}
  0x1c   : > { %s717_s6 = scalar_lea.vmem %s940_s22, 1728  ;;  %p725_p2 = scmp.lt.s32.totalorder %s940_s22, %s940_s22 }
  0x1d   : > { %p718_p9 = scmp.ne.s32.totalorder %s940_s22, %s717_s6  ;;  %p726_p12 = scmp.lt.s32.totalorder %s717_s6, %s717_s6 }
  0x1f   : > { %p720_p10 = pnand %p718_p9, %p706_p13  ;;  %p727_p0 = por %p726_p12, %p725_p2 }
  0x21   : > { %p721_p1 = pneg %p720_p10 }
  0x23   : > { %p728_p6 = pnand %p727_p0, %p721_p1 }
  0x25   : > { %731 = shalt.err (!%p728_p6)
}
  0x26   : > { %s864_s7 = smov 64   ;;  %s865_s8 = smov 4  }
  0x27   : > { %623 = dma.hbm_to_vmem [thread:$0]  (!%p947_p11), %s1144_s1, 1728, %s940_s22, [#allocation6], %s864_s7, %s864_s7, %s865_s8  }
  0x28   : > { %s732_s21 = scalar_lea.hbm %s1145_s2, 128 }
  0x29   : > { %p733_p2 = scmp.ne.s32.totalorder %s1145_s2, %s732_s21  ;;  %p739_p10 = scmp.lt.u32.totalorder %s732_s21, %s1145_s2 }
  0x2b   : > { %p735_p1 = pnand %p733_p2, %p706_p13 }
  0x2d   : > { %p736_p6 = pneg %p735_p1 }
  0x2f   : > { %p741_p3 = pnand %p739_p10, %p736_p6 }
  0x31   : > { %744 = shalt.err (!%p741_p3)
}
  0x32   : > { %s745_s22 = scalar_lea.vmem %s951_s25, 128  ;;  %p753_p12 = scmp.lt.s32.totalorder %s951_s25, %s951_s25 }
  0x33   : > { %p746_p5 = scmp.ne.s32.totalorder %s951_s25, %s745_s22  ;;  %p754_p0 = scmp.lt.s32.totalorder %s745_s22, %s745_s22 }
  0x35   : > { %p748_p7 = pnand %p746_p5, %p706_p13  ;;  %p755_p2 = por %p754_p0, %p753_p12 }
  0x37   : > { %p749_p9 = pneg %p748_p7 }
  0x39   : > { %p756_p1 = pnand %p755_p2, %p749_p9 }
  0x3b   : > { %759 = shalt.err (!%p756_p1)
}
  0x3c   : > { %626 = dma.hbm_to_vmem [thread:$0]  (!%p947_p11), %s1145_s2, 128, %s951_s25, [#allocation6]  }
  0x3d   : > { %s1006_s4 = sadd.s32 1, %s860_s15   ;;  %s27_s23 = sadd.s32 1, %s856_s14 }
  0x3e   : > { %s24_s5 = ssub.s32 %s860_s15, %s1006_s4  ;;  %p34_p13 = scmp.ne.s32.totalorder %s856_s14, %s852_s13 }
  0x3f   : > { %p25_p6 = scmp.eq.s32.totalorder %s24_s5, 0  ;;  %p35_p10 = scmp.eq.s32.totalorder %s860_s15, 0 }
  0x40   : > { %p1154_p3 = scmp.eq.s32.totalorder %s917_s16, 1  ;;  %p637_p7 = scmp.lt.s32.totalorder %s860_s15, 2 }
  0x41   : > { %s1022_s7 = scalar_select %p25_p6, %s856_s14, %s27_s23  }
  0x42   : > { %p1016_p5 = por %p1154_p3, %p34_p13  ;;  %p36_p9 = por %p35_p10, %p34_p13 }
  0x43   : > { %s156_s8 = sand.u32 1, %s856_s14   ;;  %s606_s25 = sshll.u32 %s860_s15, 8 }
  0x44   : > { %s1155_s6 = scalar_select %p1016_p5, 1, 0 }
  0x45   : > { %s574_s9 = sshll.u32 %s156_s8, 4  ;;  %s1029_s17 = scalar_lea.hbm %s1143_s0, %s606_s25 }
  0x46   : > { %s160_s21 = scalar_lea.vmem [#allocation2], %s574_s9  ;;  %p1033_p11 = pnand %p637_p7, %p36_p9 }
  0x47   : > { %s167_s24 = sshll.u32 %s160_s21, 4  ;;  %s1037_s27 = scalar_lea.sflag [#allocation3], %s156_s8  ;;  %s1031_s24 = int_to_ptr.vmem [resolvable:$true] %s167_s24 }
  0x48   : > { %s760_s28 = scalar_lea.hbm %s1029_s17, 256  ;;  %p762_p0 = pneg %p1033_p11 }
  0x49   : > { %p761_p12 = scmp.ne.s32.totalorder %s1029_s17, %s760_s28  ;;  %s765_s30 = scalar_lea.hbm %s1143_s0, 512 }
  0x4a   : > { %p766_p13 = scmp.lt.u32.totalorder %s1029_s17, %s1143_s0  ;;  %p767_p6 = scmp.lt.u32.totalorder %s765_s30, %s760_s28 }
  0x4b   : > { %p763_p2 = pnand %p762_p0, %p761_p12  ;;  %p769_p3 = scmp.lt.u32.totalorder %s760_s28, %s1029_s17 }
  0x4c   : > { %p768_p10 = por %p767_p6, %p766_p13 }
  0x4d   : > { %p764_p1 = pneg %p763_p2 }
  0x4e   : > { %p770_p7 = por %p769_p3, %p768_p10 }
  0x50   : > { %p771_p9 = pnand %p770_p7, %p764_p1 }
  0x52   : > { %774 = shalt.err (!%p771_p9)
}
  0x53   : > { %s775_s8 = scalar_lea.vmem %s1031_s24, 256  ;;  %s866_s9 = smov [#allocation2]  }
  0x54   : > { %p776_p12 = scmp.ne.s32.totalorder %s1031_s24, %s775_s8  ;;  %s780_s25 = sshll.u32 %s866_s9, 4  ;;  %s781_s25 = int_to_ptr.vmem [resolvable:$false] %s780_s25 }
  0x55   : > { %s782_s10 = scalar_lea.vmem %s781_s25, 512  ;;  %p783_p4 = scmp.lt.s32.totalorder %s1031_s24, %s781_s25 }
  0x56   : > { %p778_p2 = pnand %p776_p12, %p762_p0  ;;  %p784_p13 = scmp.lt.s32.totalorder %s782_s10, %s775_s8 }
  0x58   : > { %p779_p5 = pneg %p778_p2  ;;  %p785_p6 = por %p784_p13, %p783_p4 }
  0x5a   : > { %p786_p10 = pnand %p785_p6, %p779_p5 }
  0x5c   : > { %789 = shalt.err (!%p786_p10)
}
  0x5d   : > { %s867_s11 = smov 128   ;;  %s868_s21 = smov 8  }
  0x5e   : > { %630 = dma.hbm_to_vmem [thread:$0]  (!%p1033_p11), %s1029_s17, 256, %s1031_s24, %s1037_s27, %s867_s11, %s867_s11, %s868_s21  }
  0x5f   : > { %179 = sbr.rel (%p936_p8) target bundleno = 1390 (0x56e), region = 32  ;;  %s1068_s28 = sand.u32 (!%p936_p8), 1, %s852_s13  }
  0x60   : > { %s578_s22 = sshll.u32 (!%p936_p8), %s1068_s28, 4  ;;  %s182_s29 = scalar_lea.sflag (!%p936_p8), [#allocation3], %s1068_s28 }
  0x61   : > { %s1074_s30 = scalar_lea.vmem (!%p936_p8), [#allocation2], %s578_s22  ;;  %p1157_p4 = scmp.ne.s32.totalorder (!%p936_p8), %s1150_s18, 0 }
  0x66   : > { %835 = dma.done.wait (%p1157_p4), %s182_s29, 256  }
  0x67   : > { %837 = vsyncadd (%p1157_p4), %s182_s29, 4294967040  ;;  %p1158_p5 = scmp.eq.s32.totalorder %s917_s16, 0 }
  0x69   : > { %839 = dma.done.wait (%p1158_p5), [#allocation6], 1856   ;;  %p1159_p8 = pmov %p1158_p5 }
  0x6a   : > { %v869_v0 = vmov 0   ;;  %v685_v1 = vld [vmem:[#allocation5] sm:$0xff]   ;;  %v686_v2 = vld [vmem:[#allocation5 + $0x8] sm:$0xff]   ;;  %v687_v3 = vld [vmem:[#allocation5 + $0x10] sm:$0xff]   ;;  %vm336_vm0 = vcmask 719872   ;;  %vm340_vm1 = vcmask 1043456   ;;  %v405_v35 = vlaneseq }
  0x6b   : > { %841 = vsyncadd (%p1159_p8), [#allocation6], 4294965440  ;;  %344 = vmatprep.subr.bf16.mxu0 %v869_v0  ;;  %v688_v4 = vld [vmem:[#allocation5 + $0x18] sm:$0xff]   ;;  %v689_v5 = vld [vmem:[#allocation5 + $0x20] sm:$0xff]   ;;  %s870_s18 = smov 8   ;;  %s871_s20 = smov 16  }
  0x6c   : > { %345 = vmatpush1.bf16.msra.mxu0 %v685_v1  ;;  %v701_v6 = vld [vmem:[%s1074_s30 + $0x4] ss:$8 sps:$4 sm:$0xff]   ;;  %v698_v15 = vld [vmem:[#allocation5 + $0x68] ss:$0 sps:$4 sm:$0xff]   ;;  %s872_s17 = smov 32   ;;  %s873_s24 = smov 64  }
  0x6d   : > { %346 = vmatprep.subr.bf16.mxu0 %v869_v0  ;;  %598 = vmatprep.mubr.msk.bf16.mxu0 %vm336_vm0, %v701_v6  ;;  %v690_v7 = vld [vmem:[#allocation5 + $0x28] sm:$0xff]   ;;  %v691_v8 = vld [vmem:[#allocation5 + $0x30] sm:$0xff]   ;;  %v692_v9 = vld [vmem:[#allocation5 + $0x38] sm:$0xff]   ;;  %v342_v16 = vsel %vm340_vm1, %v698_v15, 0  ;;  %v406_v36 = vshrl.u32 %v405_v35, 7  ;;  %s607_s26 = sshll.u32 %s917_s16, 8 }
  0x6e   : > { %v693_v10 = vld [vmem:[#allocation5 + $0x40] sm:$0xff]   ;;  %v694_v11 = vld [vmem:[#allocation5 + $0x48] sm:$0xff]   ;;  %v695_v12 = vld [vmem:[#allocation5 + $0x50] sm:$0xff]   ;;  %s215_s27 = scalar_lea.vmem [#allocation8], %s578_s22  ;;  %s1096_s9 = scalar_lea.hbm %s1146_s3, %s607_s26 }
  0x6f   : > { %v696_v13 = vld [vmem:[#allocation5 + $0x58] sm:$0xff]   ;;  %v697_v14 = vld [vmem:[#allocation5 + $0x60] sm:$0xff]   ;;  %v407_v38 = vsub.s32 0, %v406_v36  ;;  %v433_v63 = vld [vmem:[#allocation7 + $0x1] sm:$0x1]  ;;  %s477_s23 = sshll.u32 %s215_s27, 4  ;;  %s1098_s23 = int_to_ptr.vmem [resolvable:$true] %s477_s23 }
  0x70   : > { %347 = vmatpush1.bf16.msra.mxu0 %v686_v2  ;;  %v699_v17 = vld [vmem:[%s1074_s30] ss:$8 sps:$4 sm:$0xff]   ;;  %v600_v6 = vld [vmem:[#allocation7 + $0x3] ss:$0 sm:$0xff]  ;;  %s464_s16 = scalar_lea.sflag [#allocation4], %s1068_s28  ;;  %s790_s25 = scalar_lea.vmem %s1098_s23, 256 }
  0x71   : > { %348 = vmatprep.subr.bf16.mxu0 %v869_v0  ;;  %p791_p11 = scmp.ne.s32.totalorder %s1098_s23, %s790_s25  ;;  %p1160_p0 = scmp.ne.s32.totalorder %s1155_s6, 0 }
  0x72   : > { %s874_s10 = smov [#allocation8]  }
  0x73   : > { %p792_p1 = pnand %p791_p11, %p1160_p0  ;;  %s794_s11 = sshll.u32 %s874_s10, 4  ;;  %s795_s11 = int_to_ptr.vmem [resolvable:$false] %s794_s11 }
  0x74   : > { %349 = vmatpush1.bf16.msra.mxu0 %v687_v3  ;;  %v599_v3 = vld [vmem:[#allocation7 + $0x2] ss:$0 sm:$0xff]  ;;  %s796_s21 = scalar_lea.vmem %s795_s11, 512  ;;  %p797_p7 = scmp.lt.s32.totalorder %s1098_s23, %s795_s11 }
  0x75   : > { %350 = vmatprep.subr.bf16.mxu0 %v869_v0  ;;  %p793_p3 = pneg %p792_p1  ;;  %p798_p9 = scmp.lt.s32.totalorder %s796_s21, %s790_s25 }
  0x77   : > { %p799_p12 = por %p798_p9, %p797_p7 }
  0x78   : > { %351 = vmatpush1.bf16.msra.mxu0 %v688_v4 }
  0x79   : > { %352 = vmatprep.subr.bf16.mxu0 %v869_v0  ;;  %p800_p2 = pnand %p799_p12, %p793_p3 }
  0x7c   : > { %353 = vmatpush1.bf16.msra.mxu0 %v689_v5 }
  0x7d   : > { %354 = vmatprep.subr.bf16.mxu0 %v869_v0 }
  0x80   : > { %355 = vmatpush1.bf16.msra.mxu0 %v690_v7 }
  0x81   : > { %356 = vmatprep.subr.bf16.mxu0 %v869_v0 }
  0x84   : > { %357 = vmatpush1.bf16.msra.mxu0 %v691_v8 }
  0x85   : > { %358 = vmatprep.subr.bf16.mxu0 %v869_v0 }
  0x88   : > { %359 = vmatpush1.bf16.msra.mxu0 %v692_v9 }
  0x89   : > { %360 = vmatprep.subr.bf16.mxu0 %v869_v0 }
  0x8c   : > { %361 = vmatpush1.bf16.msra.mxu0 %v693_v10 }
  0x8d   : > { %362 = vmatprep.subr.bf16.mxu0 %v869_v0 }
  0x90   : > { %363 = vmatpush1.bf16.msra.mxu0 %v694_v11 }
  0x91   : > { %364 = vmatprep.subr.bf16.mxu0 %v869_v0 }
  0x94   : > { %365 = vmatpush1.bf16.msra.mxu0 %v695_v12 }
  0x95   : > { %366 = vmatprep.subr.bf16.mxu0 %v869_v0 }
  0x98   : > { %367 = vmatpush1.bf16.msra.mxu0 %v696_v13 }
  0x99   : > { %368 = vmatprep.subr.bf16.mxu0 %v869_v0 }
  0x9c   : > { %369 = vmatpush1.bf16.msra.mxu0 %v697_v14 }
  0x9d   : > { %370 = vmatprep.subr.bf16.mxu0 %v869_v0 }
  0xa0   : > { %371 = vmatpush1.bf16.msra.mxu0 %v342_v16 }
  0xa3   : > { %377 = vmatmul.mubr.bf16.vlgmr.msra.gmra.mrb[0].mxu0 %v699_v17 }
 0x176   : > { %v378_v18 = vpop.f32.mrb[0].mxu0 }
 0x177   : > { %v380_v19 = vpop.f32.mrb[1].mxu0 }
 0x178   : > { %v381_v20 = vpop.f32.mrb[2].mxu0 }
 0x179   : > { %v385_v21 = vadd.f32 %v381_v20, %v378_v18  ;;  %v383_v22 = vpop.f32.mrb[3].mxu0 }
 0x17b   : > { %v386_v23 = vrot.slane %v385_v21, 4 }
 0x17d   : > { %v387_v24 = vadd.f32 %v386_v23, %v385_v21 }
 0x17f   : > { %v388_v25 = vrot.slane %v387_v24, 2 }
 0x181   : > { %v389_v26 = vadd.f32 %v388_v25, %v387_v24 }
 0x183   : > { %v390_v27 = vrot.slane %v389_v26, 1 }
 0x185   : > { %v391_v28 = vadd.f32 %v390_v27, %v389_v26 }
 0x187   : > { %392 = vrot.lane.b32.xlu0 %v391_v28, %s870_s18 }
 0x1f9   : > { %v393_v29 = vpop.permute.xlu0 %392 }
 0x1fa   : > { %v394_v30 = vadd.f32 %v393_v29, %v391_v28 }
 0x1fc   : > { %395 = vrot.lane.b32.xlu0 %v394_v30, %s871_s20 }
 0x26e   : > { %v396_v31 = vpop.permute.xlu0 %395 }
 0x26f   : > { %v397_v32 = vadd.f32 %v396_v31, %v394_v30 }
 0x271   : > { %398 = vrot.lane.b32.xlu1 %v397_v32, %s872_s17 }
 0x2e3   : > { %v399_v33 = vpop.permute.xlu1 %398 }
 0x2e4   : > { %v400_v34 = vadd.f32 %v399_v33, %v397_v32 }
 0x2e6   : > { %401 = vrot.lane.b32.xlu1 %v400_v34, %s873_s24 }
 0x358   : > { %v402_v37 = vpop.permute.xlu1 %401 }
 0x359   : > { %v403_v39 = vadd.f32 %v402_v37, %v400_v34 }
 0x35b   : > { %v404_v40 = vmul.f32 0.00390625, %v403_v39 }
 0x35d   : > { %v408_v41 = vrot.slane %v404_v40, %v407_v38 }
 0x35f   : > { %v409_v42 = vsub.f32 %v378_v18, %v408_v41  ;;  %v410_v43 = vsub.f32 %v381_v20, %v408_v41 }
 0x361   : > { %v411_v44 = vmul.f32 %v409_v42, %v409_v42  ;;  %v412_v45 = vmul.f32 %v410_v43, %v410_v43 }
 0x363   : > { %v413_v46 = vadd.f32 %v412_v45, %v411_v44 }
 0x365   : > { %v414_v47 = vrot.slane %v413_v46, 4 }
 0x367   : > { %v415_v48 = vadd.f32 %v414_v47, %v413_v46 }
 0x369   : > { %v416_v49 = vrot.slane %v415_v48, 2 }
 0x36b   : > { %v417_v50 = vadd.f32 %v416_v49, %v415_v48 }
 0x36d   : > { %v418_v51 = vrot.slane %v417_v50, 1 }
 0x36f   : > { %v419_v52 = vadd.f32 %v418_v51, %v417_v50 }
 0x371   : > { %420 = vrot.lane.b32.xlu0 %v419_v52, %s870_s18 }
 0x3e3   : > { %v421_v53 = vpop.permute.xlu0 %420 }
 0x3e4   : > { %v422_v54 = vadd.f32 %v421_v53, %v419_v52 }
 0x3e6   : > { %423 = vrot.lane.b32.xlu1 %v422_v54, %s871_s20 }
 0x458   : > { %v424_v55 = vpop.permute.xlu1 %423 }
 0x459   : > { %v425_v56 = vadd.f32 %v424_v55, %v422_v54 }
 0x45b   : > { %426 = vrot.lane.b32.xlu0 %v425_v56, %s872_s17 }
 0x4cd   : > { %v427_v57 = vpop.permute.xlu0 %426 }
 0x4ce   : > { %v428_v58 = vadd.f32 %v427_v57, %v425_v56 }
 0x4d0   : > { %429 = vrot.lane.b32.xlu1 %v428_v58, %s873_s24 }
 0x542   : > { %v430_v59 = vpop.permute.xlu1 %429 }
 0x543   : > { %v431_v60 = vadd.f32 %v430_v59, %v428_v58 }
 0x545   : > { %v432_v61 = vmul.f32 0.00390625, %v431_v60 }
 0x547   : > { %v434_v62 = vadd.f32 1e-05, %v432_v61 }
 0x549   : > { %702 = vrsqrt.f32 %v434_v62 }
 0x553   : > { %v703_v0 = vpop.eup %702 }
 0x554   : > { %v436_v1 = vmul.f32 %v703_v0, %v433_v63 }
 0x556   : > { %v440_v2 = vrot.slane %v436_v1, %v407_v38 }
 0x558   : > { %v441_v4 = vmul.f32 %v440_v2, %v409_v42  ;;  %v442_v5 = vmul.f32 %v440_v2, %v410_v43 }
 0x55a   : > { %v448_v7 = vadd.f32 %v599_v3, %v441_v4  ;;  %v449_v8 = vadd.f32 %v599_v3, %v442_v5 }
 0x55c   : > { %vm451_vm2 = vcmp.ge.f32.partialorder %v448_v7, 0.0  ;;  %vm452_vm3 = vcmp.ge.f32.partialorder %v449_v8, 0.0  ;;  %v457_v9 = vmul.f32 %v600_v6, %v448_v7  ;;  %v458_v10 = vmul.f32 %v600_v6, %v449_v8 }
 0x55e   : > { %v459_v11 = vsel %vm451_vm2, %v448_v7, %v457_v9  ;;  %v460_v12 = vsel %vm452_vm3, %v449_v8, %v458_v10 }
 0x55f   : > { %461 = vst [vmem:[%s215_s27] sm:$0xff] %v459_v11  ;;  %462 = vst [vmem:[%s215_s27 + $0x8] sm:$0xff] %v460_v12 }
 0x560   : > { %803 = shalt.err (!%p800_p2)
}
 0x561   : > { %s804_s22 = scalar_lea.hbm %s1096_s9, 256  ;;  %s808_s20 = scalar_lea.hbm %s1146_s3, 512 }
 0x562   : > { %p805_p13 = scmp.ne.s32.totalorder %s1096_s9, %s804_s22  ;;  %p809_p4 = scmp.lt.u32.totalorder %s1096_s9, %s1146_s3 }
 0x563   : > { %p810_p5 = scmp.lt.u32.totalorder %s808_s20, %s804_s22  ;;  %p812_p11 = scmp.lt.u32.totalorder %s804_s22, %s1096_s9 }
 0x564   : > { %p806_p6 = pnand %p805_p13, %p1160_p0 }
 0x565   : > { %p811_p8 = por %p810_p5, %p809_p4 }
 0x566   : > { %p807_p10 = pneg %p806_p6 }
 0x567   : > { %p813_p1 = por %p812_p11, %p811_p8 }
 0x569   : > { %p814_p3 = pnand %p813_p1, %p807_p10 }
 0x56b   : > { %817 = shalt.err (!%p814_p3)
}
 0x56c   : > { %s875_s26 = smov 128  }
 0x56d   : > { %618 = dma.vmem_to_hbm [thread:$0]  (%p1160_p0), %s1098_s23, 256, %s1096_s9, %s464_s16, %s875_s26, %s875_s26, %s870_s18  }
 0x56e PF: > { %s492_s27 = sand.u32 1, %s848_s12   ;;  %p1161_p7 = scmp.ne.s32.totalorder %s1151_s19, 0 }
 0x56f   : > { %p1162_p9 = scmp.ge.s32.totalorder %s860_s15, 2  ;;  %s493_s5 = scalar_lea.sflag [#allocation4], %s492_s27 }
 0x571   : > { %p632_p12 = pnand %p1162_p9, %p1161_p7 }
 0x573   : > { %843 = dma.done.wait (!%p632_p12), %s493_s5, 256  }
 0x574   : > { %845 = vsyncadd (!%p632_p12), %s493_s5, 4294967040  ;;  %p17_p2 = scmp.ge.s32.totalorder %s1006_s4, 4   ;;  %s1163_s12 = smov %s852_s13 }
 0x575   : > { %s1164_s13 = smov %s856_s14  ;;  %s1165_s14 = smov %s1022_s7 }
 0x576   : > { %s1166_s15 = smov %s1006_s4  ;;  %19 = sbr.rel (!%p17_p2) target bundleno = 6 (0x6), region = 85 }
 0x57d   :  { %498 = vsyncpa [#allocation3], 1 }
 0x57e   :  { %500 = vsyncpa [#allocation3 + $0x1], 1 }
 0x57f   :  { %501 = vsyncpa [#allocation6], 1 }
 0x580   :  { %502 = vsyncpa [#allocation4], 1 }
 0x581   :  { %504 = vsyncpa [#allocation4 + $0x1], 1 }

</bundles_post_ra>
